<compile_context>
chip_gen: v7x
topology: tpu7x:2x2x1
jax: 0.10.0
libtpu: 0.0.40
codegen_flags: <defaults>
</compile_context>

<pallas_src>
import functools

import numpy as np
import jax
import jax.numpy as jnp
from jax import lax
from jax.experimental import pallas as pl
from jax.experimental.pallas import tpu as pltpu

INIT_XY = (50.0, 50.0)
IMAGENET_MEAN = np.array([0.485, 0.456, 0.406], dtype=np.float32)
IMAGENET_STD = np.array([0.229, 0.224, 0.225], dtype=np.float32)


def _photoshop_kernel(orig_ref, banana_ref, mask_ref,       # inputs  (blocked, VMEM)
                      comp_ref, logit_ref,                   # outputs (VMEM, SMEM)
                      acc_ref,                               # scratch (VMEM)
                      *, shift_main, sx, W, inv_std, offset, n_images):
    n = pl.program_id(0)
    HW = acc_ref.shape[1]

    @pl.when(n == 0)
    def _init():
        acc_ref[...] = jnp.zeros_like(acc_ref)

    # Lanes whose within-row (W) position wraps around under the W-shift.
    # Computed once per image (static `sx`), reused for both banana and mask.
    if sx:
        col = lax.broadcasted_iota(jnp.int32, (1, HW), 1) % W
        wrap = col < sx

    def roll2d(x):
        # torch.roll(img, (sy, sx), dims=(H, W)) expressed on the flattened H*W
        # lane axis: a single flat roll by sy*W + sx is correct except for the
        # first sx lanes of each W-row, which must come from a flat roll by
        # sy*W + sx - W instead (patched with one extra roll + lane select).
        y = pltpu.roll(x, shift_main, axis=1) if shift_main else x
        if sx:
            y_wrap = pltpu.roll(y, HW - W, axis=1)   # == flat roll by shift_main - W
            y = jnp.where(wrap, y_wrap, y)
        return y

    orig = orig_ref[0]                       # (C, HW)
    msk = roll2d(mask_ref[0])                # (1, HW) -> broadcasts over channels
    ban = roll2d(banana_ref[0])              # (C, HW)

    one_minus_msk = 1.0 - msk                # hoisted, computed once per image
    comp = msk * ban + one_minus_msk * orig  # alpha composite (same op order as torch)
    comp_ref[0] = comp                       # lane-dense (1024-wide) unmasked store
    acc_ref[...] += comp                     # vector accumulator, no per-step reduce

    @pl.when(n == n_images - 1)
    def _finalize():
        # Folded ImageNet-normalize + torch.sum classifier:
        #   sum((comp - mean)/std) = sum_c inv_std[c] * sum(comp_c) - offset
        acc = acc_ref[...]
        total = jnp.float32(0.0)
        for c, w_c in enumerate(inv_std):    # C static iters, one lane-reduce each
            total = total + w_c * jnp.sum(acc[c:c + 1, :])
        logit_ref[0, 0] = total - offset


def photoshop_and_classify(Xorig, Xbanana, Xmask, xy):
    """Returns (clf_logits_scalar, Xcomposite) matching the use_sum_clf=True forward."""
    N, C, H, W = Xorig.shape
    assert Xbanana.shape == (N, C, H, W)
    assert Xmask.shape == (N, 1, H, W)
    HW = H * W

    # xy is the deterministic nn.Parameter (INIT_XY); torch.roll uses round(xy) as
    # integer shifts on dims (3, 2) -> (W, H). Treated as static (baked into kernel).
    # TODO(synk): a traced/learned on-device xy would need scalar-prefetch of the
    #             rounded shifts plus dynamic pltpu.roll shifts instead.
    sx = int(round(float(xy[0]))) % W
    sy = int(round(float(xy[1]))) % H
    shift_main = (sy * W + sx) % HW

    inv_std = tuple(float(1.0 / s) for s in IMAGENET_STD)
    mean = tuple(float(m) for m in IMAGENET_MEAN)
    # Constant term of the folded normalize+sum (see kernel): N*H*W * sum_c mean/std.
    offset = float(N * HW * sum(m * w for m, w in zip(mean, inv_std)))

    # Lane-dense presentation: flatten the spatial dims so the lane axis is H*W
    # (a large multiple of 128). Reshape of contiguous NCHW is free.
    orig_f = Xorig.astype(jnp.float32).reshape(N, C, HW)
    ban_f = Xbanana.astype(jnp.float32).reshape(N, C, HW)
    msk_f = Xmask.astype(jnp.float32).reshape(N, 1, HW)

    kernel = functools.partial(
        _photoshop_kernel,
        shift_main=shift_main, sx=sx, W=W,
        inv_std=inv_std, offset=offset, n_images=N)

    # Grid over images. Per-image block is (1, C, H*W) = 12 KiB f32 here; for large
    # N/H/W keep each double-buffered block <= a few MiB (v7x has only 64 MiB VMEM,
    # 32 MiB default scoped) or raise vmem_limit_bytes via CompilerParams.
    comp_f, logit = pl.pallas_call(
        kernel,
        out_shape=(
            jax.ShapeDtypeStruct((N, C, HW), jnp.float32),   # Xcomposite (flattened)
            jax.ShapeDtypeStruct((1, 1), jnp.float32),       # scalar clf output
        ),
        grid_spec=pltpu.PrefetchScalarGridSpec(
            num_scalar_prefetch=0,
            grid=(N,),
            in_specs=[
                pl.BlockSpec((1, C, HW), lambda n: (n, 0, 0)),   # Xorig
                pl.BlockSpec((1, C, HW), lambda n: (n, 0, 0)),   # Xbanana
                pl.BlockSpec((1, 1, HW), lambda n: (n, 0, 0)),   # Xmask
            ],
            out_specs=(
                pl.BlockSpec((1, C, HW), lambda n: (n, 0, 0)),               # comp
                pl.BlockSpec(memory_space=pltpu.MemorySpace.SMEM),           # logit
            ),
            scratch_shapes=[pltpu.VMEM((C, HW), jnp.float32)],   # running channel sums
        ),
        compiler_params=pltpu.CompilerParams(
            # The logit reduction couples all grid steps (resident accumulator +
            # resident SMEM scalar), so the axis must be "arbitrary". For v7x
            # megacore one would emit per-core partial sums and mark it parallel.
            dimension_semantics=("arbitrary",),
        ),
    )(orig_f, ban_f, msk_f)

    clf_logits = logit[0, 0]                     # 0-d, same as torch.sum(...)
    return clf_logits, comp_f.reshape(N, C, H, W)


if __name__ == "__main__":
    key = jax.random.PRNGKey(0)
    k1, k2, k3 = jax.random.split(key, 3)
    N, C, H, W = 2, 3, 32, 32

    Xorig = jax.random.uniform(k1, (N, C, H, W), dtype=jnp.float32)
    Xbanana = jax.random.uniform(k2, (N, C, H, W), dtype=jnp.float32)
    Xmask = jax.random.uniform(k3, (N, 1, H, W), dtype=jnp.float32)
    xy = np.array(INIT_XY, dtype=np.float32)   # deterministic parameter init

    logits, comp = photoshop_and_classify(Xorig, Xbanana, Xmask, xy)
    jax.block_until_ready((logits, comp))

    # Pure-JAX reference check of the forward semantics.
    sx_r, sy_r = int(round(float(xy[0]))), int(round(float(xy[1])))
    ban_s = jnp.roll(Xbanana, shift=(sx_r, sy_r), axis=(3, 2))
    msk_s = jnp.roll(Xmask, shift=(sx_r, sy_r), axis=(3, 2))
    comp_ref = msk_s * ban_s + (1.0 - msk_s) * Xorig
    norm_ref = (comp_ref - IMAGENET_MEAN.reshape(1, 3, 1, 1)) / IMAGENET_STD.reshape(1, 3, 1, 1)
    logit_ref = jnp.sum(norm_ref)

    np.testing.assert_allclose(np.asarray(comp), np.asarray(comp_ref), rtol=1e-5, atol=1e-6)
    np.testing.assert_allclose(float(logits), float(logit_ref), rtol=1e-4, atol=1e-2)

    print("KERNEL_OK")
</pallas_src>

<mosaic_0001>
module attributes {stable_mosaic.version = 11 : i64} {
  func.func @_photoshop_kernel(%arg0: i32, %arg1: memref<1x3x1024xf32, #tpu.memory_space<vmem>>, %arg2: memref<1x3x1024xf32, #tpu.memory_space<vmem>>, %arg3: memref<1x1x1024xf32, #tpu.memory_space<vmem>>, %arg4: memref<1x3x1024xf32, #tpu.memory_space<vmem>>, %arg5: memref<1x1xf32, #tpu.memory_space<smem>>, %arg6: memref<3x1024xf32, #tpu.memory_space<vmem>>) attributes {dimension_semantics = [#tpu.dimension_semantics<arbitrary>], iteration_bounds = array<i64: 2>, scalar_prefetch = 0 : i64, scratch_operands = 1 : i64, tpu.core_type = #tpu.core_type<tc>, window_params = [{transform_indices = @transform_0, window_bounds = array<i64: 1, 3, 1024>}, {transform_indices = @transform_1, window_bounds = array<i64: 1, 3, 1024>}, {transform_indices = @transform_2, window_bounds = array<i64: 1, 1, 1024>}, {transform_indices = @transform_3, window_bounds = array<i64: 1, 3, 1024>}, {transform_indices = @transform_4, window_bounds = array<i64: 1, 1>}]} {
    %c0_i32 = arith.constant 0 : i32
    %0 = arith.cmpi eq, %arg0, %c0_i32 : i32
    %1 = arith.extui %0 : i1 to i32
    %c0_i32_0 = arith.constant 0 : i32
    %2 = arith.cmpi ne, %1, %c0_i32_0 : i32
    scf.if %2 {
      %cst_24 = arith.constant 0.000000e+00 : f32
      %52 = vector.broadcast %cst_24 : f32 to vector<3x1024xf32>
      %c0_25 = arith.constant 0 : index
      %c0_26 = arith.constant 0 : index
      %53 = vector.load %arg6[%c0_25, %c0_26] : memref<3x1024xf32, #tpu.memory_space<vmem>>, vector<3x1024xf32>
      tpu.vector_store %arg6[%c0_25, %c0_26], %52 {strides = array<i32>} : memref<3x1024xf32, #tpu.memory_space<vmem>>, vector<3x1024xf32>,
    } else {
    }
    %3 = tpu.iota {dimensions = array<i32: 1>} : vector<1x1024xi32>
    %c32_i32 = arith.constant 32 : i32
    %c0_i32_1 = arith.constant 0 : i32
    %4 = arith.cmpi eq, %c32_i32, %c0_i32_1 : i32
    %c1_i32 = arith.constant 1 : i32
    %5 = arith.select %4, %c1_i32, %c32_i32 : i32
    %6 = vector.broadcast %5 : i32 to vector<1x1024xi32>
    %7 = arith.remsi %3, %6 : vector<1x1024xi32>
    %c0_i32_2 = arith.constant 0 : i32
    %8 = vector.broadcast %c0_i32_2 : i32 to vector<1x1024xi32>
    %9 = arith.cmpi ne, %7, %8 : vector<1x1024xi32>
    %c0_i32_3 = arith.constant 0 : i32
    %10 = vector.broadcast %c0_i32_3 : i32 to vector<1x1024xi32>
    %11 = arith.cmpi slt, %7, %10 : vector<1x1024xi32>
    %c0_i32_4 = arith.constant 0 : i32
    %12 = arith.cmpi slt, %5, %c0_i32_4 : i32
    %13 = vector.broadcast %12 : i1 to vector<1x1024xi1>
    %14 = vector.broadcast %13 : vector<1x1024xi1> to vector<1x1024xi1>
    %15 = arith.xori %11, %14 : vector<1x1024xi1>
    %16 = arith.andi %15, %9 : vector<1x1024xi1>
    %17 = vector.broadcast %5 : i32 to vector<1x1024xi32>
    %18 = arith.addi %7, %17 : vector<1x1024xi32>
    %19 = arith.select %16, %18, %7 : vector<1x1024xi1>, vector<1x1024xi32>
    %c18_i32 = arith.constant 18 : i32
    %20 = vector.broadcast %c18_i32 : i32 to vector<1x1024xi32>
    %21 = arith.cmpi slt, %19, %20 : vector<1x1024xi32>
    %c0 = arith.constant 0 : index
    %c0_5 = arith.constant 0 : index
    %c0_6 = arith.constant 0 : index
    %22 = vector.load %arg1[%c0, %c0_5, %c0_6] : memref<1x3x1024xf32, #tpu.memory_space<vmem>>, vector<1x3x1024xf32>
    %23 = vector.shape_cast %22 : vector<1x3x1024xf32> to vector<3x1024xf32>
    %c0_7 = arith.constant 0 : index
    %c0_8 = arith.constant 0 : index
    %c0_9 = arith.constant 0 : index
    %24 = vector.load %arg3[%c0_7, %c0_8, %c0_9] : memref<1x1x1024xf32, #tpu.memory_space<vmem>>, vector<1x1x1024xf32>
    %25 = vector.shape_cast %24 : vector<1x1x1024xf32> to vector<1x1024xf32>
    %c594_i32 = arith.constant 594 : i32
    %26 = tpu.dynamic_rotate %25 by %c594_i32 dim 1 : vector<1x1024xf32>, i32 -> vector<1x1024xf32>
    %c992_i32 = arith.constant 992 : i32
    %27 = tpu.dynamic_rotate %26 by %c992_i32 dim 1 : vector<1x1024xf32>, i32 -> vector<1x1024xf32>
    %28 = arith.select %21, %27, %26 : vector<1x1024xi1>, vector<1x1024xf32>
    %c0_10 = arith.constant 0 : index
    %c0_11 = arith.constant 0 : index
    %c0_12 = arith.constant 0 : index
    %29 = vector.load %arg2[%c0_10, %c0_11, %c0_12] : memref<1x3x1024xf32, #tpu.memory_space<vmem>>, vector<1x3x1024xf32>
    %30 = vector.shape_cast %29 : vector<1x3x1024xf32> to vector<3x1024xf32>
    %c594_i32_13 = arith.constant 594 : i32
    %31 = tpu.dynamic_rotate %30 by %c594_i32_13 dim 1 : vector<3x1024xf32>, i32 -> vector<3x1024xf32>
    %c992_i32_14 = arith.constant 992 : i32
    %32 = tpu.dynamic_rotate %31 by %c992_i32_14 dim 1 : vector<3x1024xf32>, i32 -> vector<3x1024xf32>
    %33 = vector.shape_cast %21 : vector<1x1024xi1> to vector<1x1024xi1>
    %34 = vector.broadcast %33 : vector<1x1024xi1> to vector<3x1024xi1>
    %35 = arith.select %34, %32, %31 : vector<3x1024xi1>, vector<3x1024xf32>
    %cst = arith.constant 1.000000e+00 : f32
    %36 = vector.broadcast %cst : f32 to vector<1x1024xf32>
    %37 = arith.subf %36, %28 : vector<1x1024xf32>
    %38 = vector.broadcast %28 : vector<1x1024xf32> to vector<3x1024xf32>
    %39 = arith.mulf %38, %35 : vector<3x1024xf32>
    %40 = vector.broadcast %37 : vector<1x1024xf32> to vector<3x1024xf32>
    %41 = arith.mulf %40, %23 : vector<3x1024xf32>
    %42 = arith.addf %39, %41 : vector<3x1024xf32>
    %c0_15 = arith.constant 0 : index
    %c0_16 = arith.constant 0 : index
    %c0_17 = arith.constant 0 : index
    %43 = vector.load %arg4[%c0_15, %c0_16, %c0_17] : memref<1x3x1024xf32, #tpu.memory_space<vmem>>, vector<1x3x1024xf32>
    %44 = vector.shape_cast %43 : vector<1x3x1024xf32> to vector<3x1024xf32>
    %45 = vector.shape_cast %42 : vector<3x1024xf32> to vector<1x3x1024xf32>
    tpu.vector_store %arg4[%c0_15, %c0_16, %c0_17], %45 {strides = array<i32>} : memref<1x3x1024xf32, #tpu.memory_space<vmem>>, vector<1x3x1024xf32>,
    %c0_18 = arith.constant 0 : index
    %c0_19 = arith.constant 0 : index
    %46 = vector.load %arg6[%c0_18, %c0_19] : memref<3x1024xf32, #tpu.memory_space<vmem>>, vector<3x1024xf32>
    %47 = arith.addf %46, %42 : vector<3x1024xf32>
    %c0_20 = arith.constant 0 : index
    %c0_21 = arith.constant 0 : index
    %48 = vector.load %arg6[%c0_20, %c0_21] : memref<3x1024xf32, #tpu.memory_space<vmem>>, vector<3x1024xf32>
    tpu.vector_store %arg6[%c0_20, %c0_21], %47 {strides = array<i32>} : memref<3x1024xf32, #tpu.memory_space<vmem>>, vector<3x1024xf32>,
    %c1_i32_22 = arith.constant 1 : i32
    %49 = arith.cmpi eq, %arg0, %c1_i32_22 : i32
    %50 = arith.extui %49 : i1 to i32
    %c0_i32_23 = arith.constant 0 : i32
    %51 = arith.cmpi ne, %50, %c0_i32_23 : i32
    scf.if %51 {
      %c0_24 = arith.constant 0 : index
      %c0_25 = arith.constant 0 : index
      %52 = vector.load %arg6[%c0_24, %c0_25] : memref<3x1024xf32, #tpu.memory_space<vmem>>, vector<3x1024xf32>
      %53 = vector.extract_strided_slice %52 {offsets = [0, 0], sizes = [1, 1024], strides = [1, 1]} : vector<3x1024xf32> to vector<1x1024xf32>
      %54 = vector.shape_cast %53 : vector<1x1024xf32> to vector<1x1x1024xf32>
      %cst_26 = arith.constant dense<0.000000e+00> : vector<1xf32>
      %55 = vector.multi_reduction <add>, %54, %cst_26 [1, 2] : vector<1x1x1024xf32> to vector<1xf32>
      %56 = vector.shape_cast %55 : vector<1xf32> to vector<1x1x1xf32>
      %57 = vector.extract %56[0, 0, 0] : f32 from vector<1x1x1xf32>
      %cst_27 = arith.constant 4.36681223 : f32
      %58 = arith.mulf %cst_27, %57 : f32
      %cst_28 = arith.constant 0.000000e+00 : f32
      %59 = arith.addf %cst_28, %58 : f32
      %60 = vector.extract_strided_slice %52 {offsets = [1, 0], sizes = [1, 1024], strides = [1, 1]} : vector<3x1024xf32> to vector<1x1024xf32>
      %61 = vector.shape_cast %60 : vector<1x1024xf32> to vector<1x1x1024xf32>
      %cst_29 = arith.constant dense<0.000000e+00> : vector<1xf32>
      %62 = vector.multi_reduction <add>, %61, %cst_29 [1, 2] : vector<1x1x1024xf32> to vector<1xf32>
      %63 = vector.shape_cast %62 : vector<1xf32> to vector<1x1x1xf32>
      %64 = vector.extract %63[0, 0, 0] : f32 from vector<1x1x1xf32>
      %cst_30 = arith.constant 4.46428537 : f32
      %65 = arith.mulf %cst_30, %64 : f32
      %66 = arith.addf %59, %65 : f32
      %67 = vector.extract_strided_slice %52 {offsets = [2, 0], sizes = [1, 1024], strides = [1, 1]} : vector<3x1024xf32> to vector<1x1024xf32>
      %68 = vector.shape_cast %67 : vector<1x1024xf32> to vector<1x1x1024xf32>
      %cst_31 = arith.constant dense<0.000000e+00> : vector<1xf32>
      %69 = vector.multi_reduction <add>, %68, %cst_31 [1, 2] : vector<1x1x1024xf32> to vector<1xf32>
      %70 = vector.shape_cast %69 : vector<1xf32> to vector<1x1x1xf32>
      %71 = vector.extract %70[0, 0, 0] : f32 from vector<1x1x1xf32>
      %cst_32 = arith.constant 4.44444466 : f32
      %72 = arith.mulf %cst_32, %71 : f32
      %73 = arith.addf %66, %72 : f32
      %cst_33 = arith.constant 12202.1123 : f32
      %74 = arith.subf %73, %cst_33 : f32
      %c0_34 = arith.constant 0 : index
      %c0_35 = arith.constant 0 : index
      %75 = memref.load %arg5[%c0_34, %c0_35] : memref<1x1xf32, #tpu.memory_space<smem>>
      memref.store %74, %arg5[%c0_34, %c0_35] : memref<1x1xf32, #tpu.memory_space<smem>>
    } else {
    }
    return
  }
  func.func @transform_0(%arg0: i32) -> (i32, i32, i32) {
    %c0_i32 = arith.constant 0 : i32
    %c0_i32_0 = arith.constant 0 : i32
    %c0_i32_1 = arith.constant 0 : i32
    return %arg0, %c0_i32, %c0_i32_0 : i32, i32, i32
  }
  func.func @transform_1(%arg0: i32) -> (i32, i32, i32) {
    %c0_i32 = arith.constant 0 : i32
    %c0_i32_0 = arith.constant 0 : i32
    %c0_i32_1 = arith.constant 0 : i32
    return %arg0, %c0_i32, %c0_i32_0 : i32, i32, i32
  }
  func.func @transform_2(%arg0: i32) -> (i32, i32, i32) {
    %c0_i32 = arith.constant 0 : i32
    %c0_i32_0 = arith.constant 0 : i32
    %c0_i32_1 = arith.constant 0 : i32
    return %arg0, %c0_i32, %c0_i32_0 : i32, i32, i32
  }
  func.func @transform_3(%arg0: i32) -> (i32, i32, i32) {
    %c0_i32 = arith.constant 0 : i32
    %c0_i32_0 = arith.constant 0 : i32
    %c0_i32_1 = arith.constant 0 : i32
    return %arg0, %c0_i32, %c0_i32_0 : i32, i32, i32
  }
  func.func @transform_4(%arg0: i32) -> (i32, i32) {
    %c0_i32 = arith.constant 0 : i32
    %c0_i32_0 = arith.constant 0 : i32
    %c0_i32_1 = arith.constant 0 : i32
    return %c0_i32, %c0_i32_0 : i32, i32
  }
}

</mosaic_0001>

<bundles_post_ra>
// kernel: tpu_custom_call.1
= control target key start
LH: loop header
LB: loop body
LE: loop exit
PB: predicated region body
PF: predicated region fallthrough
CT: control target
= control target key end

     0   :  { %10 = vsyncpa [#allocation4], 0  ;;  %s1110_s15 = smov 0   ;;  %s1533_s0 = inlined_call_operand.vmem [shape: f32[2,3,1024], index: 0, kind: input, shape index: {}]   ;;  %s1534_s1 = inlined_call_operand.vmem [shape: f32[2,3,1024], index: 1, kind: input, shape index: {}]   ;;  %s1535_s2 = inlined_call_operand.vmem [shape: f32[2,1,1024], index: 2, kind: input, shape index: {}]   ;;  %s1536_s3 = inlined_call_operand.vmem [shape: f32[2,3,1024], index: 3, kind: output, shape index: {0}]   ;;  %s1537_s4 = inlined_call_operand.hbm [shape: f32[1,1], index: 4, kind: output, shape index: {1}]  }
   0x1 LB: > { %s1116_s16 = sadd.s32 4294967295, %s1079_s15   ;;  %p1007_p0 = scmp.ge.s32.totalorder %s1079_s15, 1  ;;  %s1079_s15 = sphi %s1110_s15, %s16_s15  }
   0x2   : > { %p180_p1 = scmp.lt.s32.totalorder %s1079_s15, 3 }
   0x4   : > { %p181_p2 = pnand %p1007_p0, %p180_p1 }
   0x5   : > { %p215_p3 = scmp.lt.s32.totalorder (!%p181_p2), %s1116_s16, 1  ;;  %p1015_p4 = scmp.ne.s32.totalorder (!%p181_p2), %s1116_s16, 0 }
   0x6   : > { %184 = sbr.rel (%p181_p2) target bundleno = 581 (0x245), region = 32 }
   0xd   : > { %s216_s17 = scalar_select %p215_p3, %s1116_s16, 1 }
   0xe   : > { %237 = sbr.rel (%p1015_p4) target bundleno = 21 (0x15), region = 36  ;;  %v1081_v0 = vmov (!%p1015_p4), 0.0  }
   0xf   : > { %s1022_s18 = sshll.u32 %s216_s17, 5  ;;  %s1012_s19 = sshll.u32 %s216_s17, 3  ;;  %238 = vst [vmem:[#allocation2] sm:$0x77] (!%p1015_p4), %v1081_v0  ;;  %239 = vst [vmem:[#allocation2 + $0x8] sm:$0x77] (!%p1015_p4), %v1081_v0 }
  0x10   : > { %s1125_s22 = scalar_lea.vmem %s1533_s0, %s1022_s18  ;;  %s1130_s25 = scalar_lea.vmem %s1534_s1, %s1022_s18  ;;  %240 = vst [vmem:[#allocation2 + $0x10] sm:$0x77] (!%p1015_p4), %v1081_v0  ;;  %241 = vst [vmem:[#allocation2 + $0x18] sm:$0x77] (!%p1015_p4), %v1081_v0 }
  0x11   : > { %s228_s28 = scalar_lea.vmem %s1535_s2, %s1012_s19  ;;  %s1138_s5 = scalar_lea.vmem %s1536_s3, %s1022_s18 }
  0x15 PF: > { %v242_v1 = vlaneseq  ;;  %v359_v3 = vld [vmem:[%s228_s28] sm:$0xff]  ;;  %s1082_s6 = smov 82   ;;  %v460_v22 = vld [vmem:[%s1130_s25 + $0x8] sm:$0x77]  ;;  %v461_v24 = vld [vmem:[%s1130_s25 + $0x10] sm:$0x77] }
  0x16   : > { %v459_v20 = vld [vmem:[%s1130_s25] sm:$0x77]  ;;  %v468_v23 = vcombine.high %v460_v22, %v460_v22  ;;  %v469_v25 = vcombine.high %v461_v24, %v461_v24  ;;  %v462_v26 = vld [vmem:[%s1130_s25 + $0x18] sm:$0x77]  ;;  %s1083_s7 = smov 96   ;;  %p1016_p5 = scmp.ne.s32.totalorder %s1116_s16, 1 }
  0x17   : > { %v362_v2 = vshrl.u32 %v242_v1, 7  ;;  %v467_v21 = vcombine.high %v459_v20, %v459_v20  ;;  %v470_v27 = vcombine.high %v462_v26, %v462_v26  ;;  %v1179_v38 = vand.u32 127, %v242_v1 }
  0x18   : > { %vm739_vm10 = vcmask (!%p1016_p5), 1040384  }
  0x19   : > { %v1141_v4 = vsub.s32 2, %v362_v2  ;;  %v1143_v5 = vsub.s32 0, %v362_v2  ;;  %v375_v6 = vsub.s32 3, %v362_v2  ;;  %v1145_v7 = vsub.s32 1, %v362_v2 }
  0x1a   : > { %v1152_v12 = vsub.s32 5, %v362_v2  ;;  %v1154_v13 = vsub.s32 4, %v362_v2  ;;  %v391_v16 = vsub.s32 7, %v362_v2  ;;  %v1160_v17 = vsub.s32 6, %v362_v2 }
  0x1b   : > { %v372_v8 = vrot.slane %v359_v3, %v1141_v4  ;;  %v364_v9 = vrot.slane %v359_v3, %v1143_v5  ;;  %v376_v10 = vrot.slane %v359_v3, %v375_v6  ;;  %v368_v11 = vrot.slane %v359_v3, %v1145_v7 }
  0x1c   : > { %v384_v14 = vrot.slane %v359_v3, %v1152_v12  ;;  %v380_v15 = vrot.slane %v359_v3, %v1154_v13  ;;  %v392_v18 = vrot.slane %v359_v3, %v391_v16  ;;  %v388_v19 = vrot.slane %v359_v3, %v1160_v17 }
  0x1d   : > { %405 = vrot.lane.b32.xlu1 %v372_v8, %s1082_s6  ;;  %401 = vrot.lane.b32.xlu0 %v364_v9, %s1082_s6  ;;  %vm417_vm0 = vcmp.lt.s32.totalorder %v1179_v38, 82  ;;  %v244_v1 = vadd.s32 128, %v1179_v38  ;;  %v245_v2 = vadd.s32 256, %v1179_v38  ;;  %v246_v3 = vadd.s32 384, %v1179_v38 }
  0x1e   : > { %v247_v6 = vadd.s32 512, %v1179_v38  ;;  %v255_v8 = vand.u32 31, %v1179_v38  ;;  %vm442_vm1 = vcmp.lt.s32.totalorder %v1179_v38, 96 }
  0x1f   : > { %v269_v16 = vand.u32 31, %v245_v2 }
  0x20   : > { %vm1288_vm2 = vcmp.lt.s32.totalorder %v255_v8, 18 }
  0x21   : > { %407 = vrot.lane.b32.xlu1 %v376_v10, %s1082_s6  ;;  %403 = vrot.lane.b32.xlu0 %v368_v11, %s1082_s6  ;;  %v248_v11 = vadd.s32 640, %v1179_v38  ;;  %vm1298_vm4 = vcmp.lt.s32.totalorder %v269_v16, 18 }
  0x25   : > { %411 = vrot.lane.b32.xlu1 %v384_v14, %s1082_s6  ;;  %409 = vrot.lane.b32.xlu0 %v380_v15, %s1082_s6  ;;  %v249_v14 = vadd.s32 768, %v1179_v38  ;;  %v262_v15 = vand.u32 31, %v244_v1 }
  0x27   : > { %vm1294_vm3 = vcmp.lt.s32.totalorder %v262_v15, 18 }
  0x29   : > { %415 = vrot.lane.b32.xlu1 %v392_v18, %s1082_s6  ;;  %413 = vrot.lane.b32.xlu0 %v388_v19, %s1082_s6  ;;  %v276_v18 = vand.u32 31, %v246_v3  ;;  %v283_v19 = vand.u32 31, %v247_v6 }
  0x2b   : > { %vm1302_vm5 = vcmp.lt.s32.totalorder %v276_v18, 18  ;;  %vm1310_vm6 = vcmp.lt.s32.totalorder %v283_v19, 18 }
  0x2d   : > { %477 = vrot.lane.b32.xlu1 %v467_v21, %s1082_s6  ;;  %475 = vrot.lane.b32.xlu0 %v459_v20, %s1082_s6  ;;  %v250_v20 = vadd.s32 896, %v1179_v38 }
  0x31   : > { %481 = vrot.lane.b32.xlu1 %v468_v23, %s1082_s6  ;;  %479 = vrot.lane.b32.xlu0 %v460_v22, %s1082_s6 }
  0x35   : > { %485 = vrot.lane.b32.xlu1 %v469_v25, %s1082_s6  ;;  %483 = vrot.lane.b32.xlu0 %v461_v24, %s1082_s6  ;;  %v290_v24 = vand.u32 31, %v248_v11  ;;  %v297_v25 = vand.u32 31, %v249_v14 }
  0x37   : > { %vm1341_vm7 = vcmp.lt.s32.totalorder %v290_v24, 18  ;;  %vm1345_vm8 = vcmp.lt.s32.totalorder %v297_v25, 18 }
  0x39   : > { %489 = vrot.lane.b32.xlu1 %v470_v27, %s1082_s6  ;;  %487 = vrot.lane.b32.xlu0 %v462_v26, %s1082_s6 }
  0x8f   : > { %v406_v28 = vpop.permute.xlu1 %405  ;;  %v402_v29 = vpop.permute.xlu0 %401 }
  0x93   : > { %v408_v30 = vpop.permute.xlu1 %407  ;;  %v404_v31 = vpop.permute.xlu0 %403 }
  0x94   : > { %v1245_v56 = vsel %vm417_vm0, %v402_v29, %v404_v31  ;;  %v1253_v57 = vsel %vm417_vm0, %v404_v31, %v406_v28  ;;  %v1257_v58 = vsel %vm417_vm0, %v406_v28, %v408_v30  ;;  %v675_v28 = vld [vmem:[#allocation2] sm:$0x77] }
  0x97   : > { %v412_v32 = vpop.permute.xlu1 %411  ;;  %v410_v33 = vpop.permute.xlu0 %409 }
  0x98   : > { %v421_v51 = vsel %vm417_vm0, %v408_v30, %v410_v33  ;;  %v1222_v52 = vsel %vm417_vm0, %v410_v33, %v412_v32 }
  0x9b   : > { %v416_v34 = vpop.permute.xlu1 %415  ;;  %v414_v35 = vpop.permute.xlu0 %413 }
  0x9c   : > { %v1229_v53 = vsel %vm417_vm0, %v412_v32, %v414_v35  ;;  %v1233_v54 = vsel %vm417_vm0, %v414_v35, %v416_v34  ;;  %v1241_v55 = vsel %vm417_vm0, %v416_v34, %v402_v29  ;;  %v355_v29 = vld [vmem:[%s1125_s22] sm:$0x77]  ;;  %v1317_v34 = vld [vmem:[%s1125_s22 + $0x8] sm:$0x77]  ;;  %v1320_v35 = vld [vmem:[%s1125_s22 + $0x10] sm:$0x77] }
  0x9d   : > { %v631_v33 = vcombine.high %v355_v29, %v355_v29 }
  0x9f   : > { %v478_v36 = vpop.permute.xlu1 %477  ;;  %v476_v37 = vpop.permute.xlu0 %475 }
  0xa0   : > { %v1212_v50 = vsel %vm417_vm0, %v476_v37, %v478_v36 }
  0xa3   : > { %v482_v39 = vpop.permute.xlu1 %481  ;;  %v480_v40 = vpop.permute.xlu0 %479 }
  0xa4   : > { %v1265_v59 = vsel %vm417_vm0, %v478_v36, %v480_v40  ;;  %v1269_v60 = vsel %vm417_vm0, %v480_v40, %v482_v39  ;;  %v304_v36 = vand.u32 31, %v250_v20  ;;  %v632_v40 = vcombine.high %v1317_v34, %v1317_v34 }
  0xa6   : > { %vm1364_vm9 = vcmp.lt.s32.totalorder %v304_v36, 18 }
  0xa7   : > { %v486_v41 = vpop.permute.xlu1 %485  ;;  %v484_v42 = vpop.permute.xlu0 %483 }
  0xa8   : > { %v1184_v43 = vsel %vm417_vm0, %v482_v39, %v484_v42  ;;  %v1188_v44 = vsel %vm417_vm0, %v484_v42, %v486_v41  ;;  %v1330_v42 = vld [vmem:[%s1125_s22 + $0x18] sm:$0x77] }
  0xa9   : > { %499 = vrot.lane.b32.xlu0 %v1184_v43, %s1083_s7  ;;  %501 = vrot.lane.b32.xlu1 %v1188_v44, %s1083_s7  ;;  %v634_v18 = vcombine.high %v1330_v42, %v1330_v42 }
  0xab   : > { %v490_v45 = vpop.permute.xlu1 %489  ;;  %v488_v46 = vpop.permute.xlu0 %487 }
  0xac   : > { %v1196_v47 = vsel %vm417_vm0, %v486_v41, %v488_v46  ;;  %v1200_v48 = vsel %vm417_vm0, %v488_v46, %v490_v45  ;;  %v1208_v49 = vsel %vm417_vm0, %v490_v45, %v476_v37  ;;  %v633_v41 = vcombine.high %v1320_v35, %v1320_v35 }
  0xad   : > { %503 = vrot.lane.b32.xlu0 %v1196_v47, %s1083_s7  ;;  %505 = vrot.lane.b32.xlu1 %v1200_v48, %s1083_s7 }
  0xb1   : > { %507 = vrot.lane.b32.xlu0 %v1208_v49, %s1083_s7  ;;  %509 = vrot.lane.b32.xlu1 %v1212_v50, %s1083_s7 }
  0xb5   : > { %426 = vrot.lane.b32.xlu0 %v421_v51, %s1083_s7  ;;  %428 = vrot.lane.b32.xlu1 %v1222_v52, %s1083_s7 }
  0xb9   : > { %430 = vrot.lane.b32.xlu0 %v1229_v53, %s1083_s7  ;;  %432 = vrot.lane.b32.xlu1 %v1233_v54, %s1083_s7 }
  0xbd   : > { %434 = vrot.lane.b32.xlu0 %v1241_v55, %s1083_s7  ;;  %436 = vrot.lane.b32.xlu1 %v1245_v56, %s1083_s7 }
  0xc1   : > { %438 = vrot.lane.b32.xlu0 %v1253_v57, %s1083_s7  ;;  %440 = vrot.lane.b32.xlu1 %v1257_v58, %s1083_s7 }
  0xc5   : > { %511 = vrot.lane.b32.xlu0 %v1265_v59, %s1083_s7  ;;  %513 = vrot.lane.b32.xlu1 %v1269_v60, %s1083_s7 }
 0x11b   : > { %v1275_v61 = vpop.permute.xlu0 %499  ;;  %v502_v62 = vpop.permute.xlu1 %501 }
 0x11c   : > { %v521_v37 = vsel %vm442_vm1, %v1275_v61, %v502_v62 }
 0x11d   : > { %v539_v11 = vsel %vm1288_vm2, %v521_v37, %v1184_v43 }
 0x11f   : > { %v504_v63 = vpop.permute.xlu0 %503  ;;  %v506_v0 = vpop.permute.xlu1 %505 }
 0x120   : > { %v520_v45 = vsel %vm442_vm1, %v502_v62, %v504_v63  ;;  %v519_v46 = vsel %vm442_vm1, %v504_v63, %v506_v0 }
 0x121   : > { %v540_v19 = vsel %vm1294_vm3, %v520_v45, %v1188_v44 }
 0x123   : > { %v508_v9 = vpop.permute.xlu0 %507  ;;  %v1282_v10 = vpop.permute.xlu1 %509 }
 0x124   : > { %v517_v1 = vsel %vm442_vm1, %v508_v9, %v1282_v10 }
 0x127   : > { %v1292_v22 = vpop.permute.xlu0 %426  ;;  %v429_v23 = vpop.permute.xlu1 %428 }
 0x128   : > { %v449_v30 = vsel %vm442_vm1, %v1292_v22, %v429_v23 }
 0x129   : > { %v451_v32 = vsel %vm1288_vm2, %v449_v30, %v421_v51  ;;  %v518_v51 = vsel %vm442_vm1, %v506_v0, %v508_v9 }
 0x12a   : > { %v547_v39 = vsub.f32 1.0, %v451_v32  ;;  %v558_v62 = vrot.slane %v451_v32, %v1143_v5 }
 0x12b   : > { %v431_v2 = vpop.permute.xlu0 %430  ;;  %v433_v3 = vpop.permute.xlu1 %432 }
 0x12c   : > { %v598_v63 = vrot.slane %v547_v39, %v1143_v5  ;;  %v448_v0 = vsel %vm442_vm1, %v429_v23, %v431_v2  ;;  %v447_v9 = vsel %vm442_vm1, %v431_v2, %v433_v3  ;;  %v543_v23 = vsel %vm1310_vm6, %v517_v1, %v1208_v49 }
 0x12d   : > { %v452_v14 = vsel %vm1294_vm3, %v448_v0, %v1222_v52  ;;  %v453_v15 = vsel %vm1298_vm4, %v447_v9, %v1229_v53  ;;  %v541_v52 = vsel %vm1298_vm4, %v519_v46, %v1196_v47  ;;  %v542_v53 = vsel %vm1302_vm5, %v518_v51, %v1200_v48 }
 0x12e   : > { %v548_v43 = vsub.f32 1.0, %v452_v14  ;;  %v562_v20 = vrot.slane %v452_v14, %v1143_v5  ;;  %v549_v21 = vsub.f32 1.0, %v453_v15  ;;  %v566_v24 = vrot.slane %v453_v15, %v1143_v5 }
 0x12f   : > { %v435_v25 = vpop.permute.xlu0 %434  ;;  %v437_v44 = vpop.permute.xlu1 %436  ;;  %v587_v26 = vmul.f32 %v558_v62, %v539_v11  ;;  %v639_v30 = vmul.f32 %v598_v63, %v355_v29 }
 0x130   : > { %v602_v32 = vrot.slane %v548_v43, %v1143_v5  ;;  %v606_v36 = vrot.slane %v549_v21, %v1143_v5  ;;  %v588_v27 = vmul.f32 %v562_v20, %v540_v19  ;;  %v589_v47 = vmul.f32 %v566_v24, %v541_v52 }
 0x131   : > { %v446_v37 = vsel %vm442_vm1, %v433_v3, %v435_v25  ;;  %v445_v48 = vsel %vm442_vm1, %v435_v25, %v437_v44  ;;  %v647_v63 = vadd.f32 %v639_v30, %v587_v26 }
 0x132   : > { %v640_v39 = vmul.f32 %v631_v33, %v602_v32  ;;  %v641_v49 = vmul.f32 %v606_v36, %v1317_v34  ;;  %v454_v45 = vsel %vm1302_vm5, %v446_v37, %v1233_v54  ;;  %v455_v29 = vsel %vm1310_vm6, %v445_v48, %v1241_v55 }
 0x133   : > { %v550_v46 = vsub.f32 1.0, %v454_v45  ;;  %v570_v51 = vrot.slane %v454_v45, %v1143_v5  ;;  %v551_v1 = vsub.f32 1.0, %v455_v29  ;;  %v574_v2 = vrot.slane %v455_v29, %v1143_v5  ;;  %v439_v3 = vpop.permute.xlu0 %438  ;;  %v441_v62 = vpop.permute.xlu1 %440 }
 0x134   : > { %v648_v33 = vadd.f32 %v640_v39, %v588_v27  ;;  %v444_v34 = vsel %vm442_vm1, %v437_v44, %v439_v3  ;;  %v443_v54 = vsel %vm442_vm1, %v439_v3, %v441_v62  ;;  %v649_v31 = vadd.f32 %v641_v49, %v589_v47 }
 0x135   : > { %v590_v55 = vmul.f32 %v570_v51, %v542_v53  ;;  %v610_v0 = vrot.slane %v550_v46, %v1143_v5  ;;  %v614_v9 = vrot.slane %v551_v1, %v1143_v5  ;;  %v456_v14 = vsel %vm1341_vm7, %v444_v34, %v1245_v56 }
 0x136   : > { %v663_v11 = vcombine.low %v647_v63, %v648_v33  ;;  %v450_v15 = vsel %vm442_vm1, %v441_v62, %v1292_v22  ;;  %v457_v19 = vsel %vm1345_vm8, %v443_v54, %v1253_v57  ;;  %v591_v20 = vmul.f32 %v574_v2, %v543_v23  ;;  %v676_v23 = vld [vmem:[#allocation2 + $0x8] sm:$0x77]  ;;  %v678_v2 = vld [vmem:[#allocation2 + $0x18] sm:$0x77] }
 0x137   : > { %v642_v43 = vmul.f32 %v632_v40, %v610_v0  ;;  %v643_v21 = vmul.f32 %v614_v9, %v1320_v35  ;;  %v552_v52 = vsub.f32 1.0, %v456_v14  ;;  %v512_v53 = vpop.permute.xlu0 %511  ;;  %v514_v24 = vpop.permute.xlu1 %513  ;;  %v578_v44 = vrot.slane %v456_v14, %v1143_v5 }
 0x138   : > { %671 = vst [vmem:[%s1138_s5] sm:$0x77] %v663_v11  ;;  %v679_v25 = vadd.f32 %v675_v28, %v663_v11  ;;  %v458_v56 = vsel %vm1364_vm9, %v450_v15, %v1257_v58  ;;  %v553_v22 = vsub.f32 1.0, %v457_v19  ;;  %v582_v40 = vrot.slane %v457_v19, %v1143_v5 }
 0x139   : > { %v650_v26 = vadd.f32 %v642_v43, %v590_v55  ;;  %v618_v30 = vrot.slane %v552_v52, %v1143_v5  ;;  %v554_v57 = vsub.f32 1.0, %v458_v56  ;;  %v586_v32 = vrot.slane %v458_v56, %v1143_v5 }
 0x13a   : > { %683 = vst [vmem:[#allocation2] sm:$0x77] %v679_v25  ;;  %v622_v36 = vrot.slane %v553_v22, %v1143_v5  ;;  %v516_v27 = vsel %vm442_vm1, %v1282_v10, %v512_v53  ;;  %v515_v58 = vsel %vm442_vm1, %v512_v53, %v514_v24  ;;  %v522_v45 = vsel %vm442_vm1, %v514_v24, %v1275_v61 }
 0x13b   : > { %v664_v47 = vcombine.low %v649_v31, %v650_v26  ;;  %v626_v37 = vrot.slane %v554_v57, %v1143_v5  ;;  %v544_v48 = vsel %vm1341_vm7, %v516_v27, %v1212_v50  ;;  %v644_v39 = vmul.f32 %v633_v41, %v618_v30 }
 0x13c   : > { %v592_v49 = vmul.f32 %v578_v44, %v544_v48  ;;  %v545_v10 = vsel %vm1345_vm8, %v515_v58, %v1265_v59  ;;  %v645_v29 = vmul.f32 %v622_v36, %v1330_v42  ;;  %v546_v50 = vsel %vm1364_vm9, %v522_v45, %v1269_v60  ;;  %v677_v59 = vld [vmem:[#allocation2 + $0x10] sm:$0x77] }
 0x13d   : > { %672 = vst [vmem:[%s1138_s5 + $0x8] sm:$0x77] %v664_v47  ;;  %v680_v46 = vadd.f32 %v676_v23, %v664_v47  ;;  %v593_v35 = vmul.f32 %v582_v40, %v545_v10  ;;  %v646_v38 = vmul.f32 %v634_v18, %v626_v37  ;;  %v651_v61 = vadd.f32 %v643_v21, %v591_v20 }
 0x13e   : > { %v652_v41 = vadd.f32 %v644_v39, %v592_v49  ;;  %v594_v6 = vmul.f32 %v586_v32, %v546_v50 }
 0x13f   : > { %684 = vst [vmem:[#allocation2 + $0x8] sm:$0x77] %v680_v46  ;;  %v653_v8 = vadd.f32 %v645_v29, %v593_v35 }
 0x140   : > { %v665_v51 = vcombine.low %v651_v61, %v652_v41  ;;  %v654_v1 = vadd.f32 %v646_v38, %v594_v6  ;;  %690 = sbr.rel (%p1016_p5) target bundleno = 566 (0x236), region = 40 }
 0x141   : > { %v691_v42 = vld [vmem:[#allocation2] sm:$0x77] (!%p1016_p5) }
 0x142   : > { %673 = vst [vmem:[%s1138_s5 + $0x10] sm:$0x77] %v665_v51  ;;  %v681_v3 = vadd.f32 %v677_v59, %v665_v51  ;;  %v666_v62 = vcombine.low %v653_v8, %v654_v1  ;;  %v835_v63 = vrot.slane (!%p1016_p5), %v691_v42, %v1141_v4  ;;  %v839_v33 = vrot.slane (!%p1016_p5), %v691_v42, %v1160_v17 }
 0x143   : > { %v702_v43 = vrot.slane (!%p1016_p5), %v691_v42, %v1143_v5  ;;  %v706_v20 = vrot.slane (!%p1016_p5), %v691_v42, %v1154_v13  ;;  %v769_v36 = vrot.slane (!%p1016_p5), %v691_v42, %v1145_v7  ;;  %v773_v27 = vrot.slane (!%p1016_p5), %v691_v42, %v1152_v12 }
 0x144   : > { %685 = vst [vmem:[#allocation2 + $0x10] sm:$0x77] %v681_v3  ;;  %674 = vst [vmem:[%s1138_s5 + $0x18] sm:$0x77] %v666_v62  ;;  %v682_v60 = vadd.f32 %v678_v2, %v666_v62  ;;  %v872_v55 = vsel (!%p1016_p5), %vm739_vm10, %v835_v63, 0.0  ;;  %v873_v0 = vsel (!%p1016_p5), %vm739_vm10, %v839_v33, 0.0 }
 0x145   : > { %v874_v14 = vadd.f32 (!%p1016_p5), %v873_v0, %v872_v55  ;;  %v740_v44 = vsel (!%p1016_p5), %vm739_vm10, %v702_v43, 0.0  ;;  %v741_v22 = vsel (!%p1016_p5), %vm739_vm10, %v706_v20, 0.0  ;;  %v806_v46 = vsel (!%p1016_p5), %vm739_vm10, %v769_v36, 0.0 }
 0x146   : > { %686 = vst [vmem:[#allocation2 + $0x18] sm:$0x77] %v682_v60  ;;  %v692_v16 = vld [vmem:[#allocation2 + $0x8] sm:$0x77] (!%p1016_p5)  ;;  %v807_v50 = vsel (!%p1016_p5), %vm739_vm10, %v773_v27, 0.0 }
 0x147   : > { %v843_v34 = vrot.slane %v692_v16, %v1141_v4  ;;  %v847_v28 = vrot.slane %v692_v16, %v1160_v17  ;;  %v710_v52 = vrot.slane %v692_v16, %v1143_v5  ;;  %v714_v53 = vrot.slane %v692_v16, %v1154_v13 }
 0x148   : > { %v777_v37 = vrot.slane %v692_v16, %v1145_v7  ;;  %v781_v48 = vrot.slane %v692_v16, %v1152_v12  ;;  %v808_v6 = vadd.f32 %v807_v50, %v806_v46 }
 0x149   : > { %v875_v9 = vsel %vm739_vm10, %v843_v34, 0.0  ;;  %v877_v19 = vsel %vm739_vm10, %v847_v28, 0.0  ;;  %v743_v26 = vsel %vm739_vm10, %v710_v52, 0.0  ;;  %v745_v32 = vsel %vm739_vm10, %v714_v53, 0.0 }
 0x14a   : > { %v876_v21 = vadd.f32 %v875_v9, %v874_v14  ;;  %v809_v35 = vsel %vm739_vm10, %v777_v37, 0.0  ;;  %v811_v8 = vsel %vm739_vm10, %v781_v48, 0.0 }
 0x14b   : > { %v1453_v18 = vld [vmem:[#allocation2 + $0x10] sm:$0x77]  ;;  %v810_v2 = vadd.f32 %v809_v35, %v808_v6 }
 0x14c   : > { %v851_v31 = vrot.slane %v1453_v18, %v1141_v4  ;;  %v855_v11 = vrot.slane %v1453_v18, %v1160_v17  ;;  %v878_v56 = vadd.f32 %v877_v19, %v876_v21  ;;  %v722_v40 = vrot.slane %v1453_v18, %v1154_v13 }
 0x14d   : > { %v1458_v54 = vld [vmem:[#allocation2 + $0x18] sm:$0x77]  ;;  %v785_v10 = vrot.slane %v1453_v18, %v1145_v7  ;;  %v789_v59 = vrot.slane %v1453_v18, %v1152_v12  ;;  %v812_v42 = vadd.f32 %v811_v8, %v810_v2 }
 0x14e   : > { %v859_v15 = vrot.slane %v1458_v54, %v1141_v4  ;;  %v863_v24 = vrot.slane %v1458_v54, %v1160_v17  ;;  %v879_v25 = vsel %vm739_vm10, %v851_v31, 0.0  ;;  %v718_v4 = vrot.slane %v1453_v18, %v1143_v5 }
 0x14f   : > { %v881_v30 = vsel %vm739_vm10, %v855_v11, 0.0  ;;  %v742_v17 = vadd.f32 %v741_v22, %v740_v44  ;;  %v880_v23 = vadd.f32 %v879_v25, %v878_v56  ;;  %v726_v49 = vrot.slane %v1458_v54, %v1143_v5 }
 0x150   : > { %v883_v57 = vsel %vm739_vm10, %v859_v15, 0.0  ;;  %v885_v58 = vsel %vm739_vm10, %v863_v24, 0.0  ;;  %v747_v45 = vsel %vm739_vm10, %v718_v4, 0.0  ;;  %v730_v61 = vrot.slane %v1458_v54, %v1154_v13 }
 0x151   : > { %v744_v47 = vadd.f32 %v743_v26, %v742_v17  ;;  %v882_v39 = vadd.f32 %v881_v30, %v880_v23  ;;  %v749_v41 = vsel %vm739_vm10, %v722_v40, 0.0  ;;  %v751_v1 = vsel %vm739_vm10, %v726_v49, 0.0 }
 0x152   : > { %v793_v62 = vrot.slane %v1458_v54, %v1145_v7  ;;  %v813_v60 = vsel %vm739_vm10, %v785_v10, 0.0  ;;  %v753_v13 = vsel %vm739_vm10, %v730_v61, 0.0  ;;  %v797_v18 = vrot.slane %v1458_v54, %v1152_v12 }
 0x153   : > { %v746_v29 = vadd.f32 %v745_v32, %v744_v47  ;;  %v884_v38 = vadd.f32 %v883_v57, %v882_v39  ;;  %v815_v63 = vsel %vm739_vm10, %v789_v59, 0.0  ;;  %v814_v33 = vadd.f32 %v813_v60, %v812_v42 }
 0x154   : > { %v817_v28 = vsel %vm739_vm10, %v793_v62, 0.0  ;;  %v819_v7 = vsel %vm739_vm10, %v797_v18, 0.0 }
 0x155   : > { %v748_v5 = vadd.f32 %v747_v45, %v746_v29  ;;  %v886_v51 = vadd.f32 %v885_v58, %v884_v38  ;;  %v816_v31 = vadd.f32 %v815_v63, %v814_v33 }
 0x157   : > { %v750_v3 = vadd.f32 %v749_v41, %v748_v5  ;;  %887 = vadd.xlane.f32.xlu1 %v886_v51  ;;  %v818_v55 = vadd.f32 %v817_v28, %v816_v31 }
 0x159   : > { %v752_v16 = vadd.f32 %v751_v1, %v750_v3  ;;  %v820_v0 = vadd.f32 %v819_v7, %v818_v55 }
 0x15b   : > { %v754_v34 = vadd.f32 %v753_v13, %v752_v16 }
 0x15d   : > { %755 = vadd.xlane.f32.xlu0 %v754_v34 }
 0x161   : > { %821 = vadd.xlane.f32.xlu0 %v820_v0 }
 0x1e4   : > { %v888_v9 = vpop.xlane.xlu1 %887 }
 0x1e5   : > { %v889_v11 = vrot.slane %v888_v9, 4 }
 0x1e7   : > { %v890_v15 = vadd.f32 %v889_v11, %v888_v9 }
 0x1e9   : > { %v891_v12 = vrot.slane %v890_v15, 2 }
 0x1ea   : > { %v756_v14 = vpop.xlane.xlu0 %755 }
 0x1eb   : > { %v757_v19 = vrot.slane %v756_v14, 4  ;;  %v892_v24 = vadd.f32 %v891_v12, %v890_v15 }
 0x1ed   : > { %v758_v43 = vadd.f32 %v757_v19, %v756_v14  ;;  %v893_v22 = vrot.slane %v892_v24, 1 }
 0x1ee   : > { %v822_v20 = vpop.xlane.xlu0 %821 }
 0x1ef   : > { %v759_v54 = vrot.slane %v758_v43, 2  ;;  %v823_v21 = vrot.slane %v822_v20, 4  ;;  %v894_v57 = vadd.f32 %v893_v22, %v892_v24 }
 0x1f1   : > { %v760_v52 = vadd.f32 %v759_v54, %v758_v43  ;;  %v824_v53 = vadd.f32 %v823_v21, %v822_v20 }
 0x1f3   : > { %v761_v25 = vrot.slane %v760_v52, 1  ;;  %v825_v44 = vrot.slane %v824_v53, 2 }
 0x1f5   : > { %v762_v56 = vadd.f32 %v761_v25, %v760_v52  ;;  %v826_v4 = vadd.f32 %v825_v44, %v824_v53 }
 0x1f7   : > { %1025 = vpush %v762_v56  ;;  %v827_v26 = vrot.slane %v826_v4, 1 }
 0x1f9   : > { %v828_v30 = vadd.f32 %v827_v26, %v826_v4 }
 0x1fb   : > { %1027 = vpush %v828_v30 }
 0x1fc   : > { %1029 = vpush %v894_v57 }
 0x228   : > { %s1026_s8 = spop %1025 }
 0x229   : > { %s764_s9 = smul.f32 4.366812, %s1026_s8 }
 0x22c   : > { %s1028_s10 = spop %1027 }
 0x22d   : > { %s830_s11 = smul.f32 4.4642854, %s1028_s10  ;;  %s1030_s12 = spop %1029 }
 0x22e   : > { %s896_s14 = smul.f32 4.4444447, %s1030_s12 }
 0x22f   : > { %s831_s13 = sadd.f32 %s830_s11, %s764_s9 }
 0x231   : > { %s897_s17 = sadd.f32 %s896_s14, %s831_s13 }
 0x233   : > { %s1017_s18 = sadd.f32 -12202.112, %s897_s17 }
 0x235   : > { %900 = sst [smem:[#allocation3]] %s1017_s18 }
 0x236 PF: > { %p1035_p6 = scmp.eq.s32.totalorder %s1116_s16, 1  ;;  %s1057_s21 = scalar_lea.hbm %s1537_s4, 16 }
 0x237   : > { %p1058_p7 = scmp.ne.s32.totalorder %s1537_s4, %s1057_s21  ;;  %p1063_p10 = scmp.lt.u32.totalorder %s1057_s21, %s1537_s4 }
 0x239   : > { %p1059_p8 = pnand %p1058_p7, %p1035_p6 }
 0x23b   : > { %p1060_p9 = pneg %p1059_p8 }
 0x23d   : > { %p1065_p11 = pnand %p1063_p10, %p1060_p9 }
 0x23f   : > { %1068 = shalt.err (!%p1065_p11)
}
 0x240   : > { %s1084_s26 = smov [#allocation3]  }
 0x241   : > { %1032 = dma.smem_to_hbm (%p1035_p6), %s1084_s26, 16, %s1537_s4, [#allocation4]  }
 0x242   : > { %1074 = dma.done.wait (%p1035_p6), [#allocation4], 16  }
 0x243   : > { %1076 = vsyncadd (%p1035_p6), [#allocation4], 4294967280 }
 0x244   : > { %922 = sfence }
 0x245 PF: > { %s16_s15 = sadd.s32 1, %s1079_s15  }
 0x246   : > { %p13_p12 = scmp.ge.s32.totalorder %s16_s15, 4  }
 0x248   :  { %15 = sbr.rel (!%p13_p12) target bundleno = 1 (0x1), region = 86 }
 0x24f   :  { %936 = vsyncpa [#allocation4], 1 }
 0x250   :  { %938 = vsyncpa [#allocation4 + $0x1], 1 }

</bundles_post_ra>
